<compile_context>
chip_gen: v7x
topology: tpu7x:2x2x1
jax: 0.10.0
libtpu: 0.0.40
codegen_flags: <defaults>
</compile_context>

<pallas_src>
import jax
import jax.numpy as jnp
from jax import lax
from jax.experimental import pallas as pl
from jax.experimental.pallas import tpu as pltpu

LANES = 128
TILE_ROWS_MAX = 512  # 512 * 128 * 4 B = 256 KiB per f32 tile buffer


def dropout_kernel(seed_ref, x_ref, o_ref):
    # seed_ref: (1,) int32 in SMEM; x_ref/o_ref: (tile_rows, 128) f32 in VMEM.
    tile_rows, lanes = x_ref.shape

    # Global element index of every lane in this tile (counter for the hash).
    row_in_tile = lax.broadcasted_iota(jnp.uint32, (tile_rows, lanes), 0)
    col = lax.broadcasted_iota(jnp.uint32, (tile_rows, lanes), 1)
    row0 = (pl.program_id(0) * tile_rows).astype(jnp.uint32)
    gidx = (row0 + row_in_tile) * jnp.uint32(lanes) + col

    # Stateless PRNG: murmur3 fmix32 of (global_index + seed).
    z = gidx + seed_ref[0].astype(jnp.uint32)
    z = z ^ (z >> 16)
    z = z * jnp.uint32(0x85EBCA6B)
    z = z ^ (z >> 13)
    z = z * jnp.uint32(0xC2B2AE35)
    z = z ^ (z >> 16)

    # Full-word threshold compare: P(keep) = 0.5.
    keep = (z < jnp.uint32(0x80000000)).astype(x_ref.dtype)
    o_ref[...] = x_ref[...] * (keep * jnp.asarray(2.0, x_ref.dtype))


def dropout_p05(x, seed: int):
    """Training-mode dropout(p=0.5) on an arbitrary-shaped float array."""
    orig_shape = x.shape
    n = x.size

    # Lane-dense (rows, 128) slab, rows padded to a multiple of the tile height.
    rows = (n + LANES - 1) // LANES
    if rows >= TILE_ROWS_MAX:
        tile_rows = TILE_ROWS_MAX
    else:
        tile_rows = ((rows + 7) // 8) * 8          # sublane multiple
    rows_padded = ((rows + tile_rows - 1) // tile_rows) * tile_rows
    total = rows_padded * LANES

    x_flat = jnp.ravel(x)
    if total != n:
        x_flat = jnp.concatenate([x_flat, jnp.zeros((total - n,), x.dtype)])
    x2d = x_flat.reshape(rows_padded, LANES)

    seed_arr = jnp.asarray([seed], dtype=jnp.int32)
    grid = (rows_padded // tile_rows,)

    out2d = pl.pallas_call(
        dropout_kernel,
        out_shape=jax.ShapeDtypeStruct((rows_padded, LANES), x.dtype),
        grid=grid,
        in_specs=[
            pl.BlockSpec(memory_space=pltpu.MemorySpace.SMEM),      # seed scalar
            pl.BlockSpec((tile_rows, LANES), lambda i: (i, 0)),     # x tile
        ],
        out_specs=pl.BlockSpec((tile_rows, LANES), lambda i: (i, 0)),
        compiler_params=pltpu.CompilerParams(
            dimension_semantics=("parallel",)),
    )(seed_arr, x2d)

    return out2d.reshape(-1)[:n].reshape(orig_shape)


if __name__ == "__main__":
    key = jax.random.PRNGKey(0)

    # Shape consistent with the module's example input: x1 = torch.randn(1, 2, 2)
    x1 = jax.random.normal(key, (1, 2, 2), dtype=jnp.float32)
    y = dropout_p05(x1, seed=0)
    jax.block_until_ready(y)

    # Every output element is either 0 or exactly 2*x (dropout p=0.5 scaling).
    ok_small = bool(
        jnp.all(jnp.logical_or(y == 0.0, jnp.isclose(y, 2.0 * x1, atol=1e-6)))
    )
    assert y.shape == x1.shape and y.dtype == x1.dtype and ok_small

    # Larger input to exercise the (rows, 128) tiling + grid path.
    xb = jax.random.normal(jax.random.PRNGKey(1), (8, 512, 256), dtype=jnp.float32)
    yb = dropout_p05(xb, seed=123)
    jax.block_until_ready(yb)
    ok_big = bool(
        jnp.all(jnp.logical_or(yb == 0.0, jnp.isclose(yb, 2.0 * xb, atol=1e-5)))
    )
    keep_frac = float(jnp.mean((yb != 0.0).astype(jnp.float32)))
    assert yb.shape == xb.shape and ok_big
    assert 0.45 < keep_frac < 0.55, keep_frac   # ~50% of elements kept

    print("KERNEL_OK")
</pallas_src>

<mosaic_0001>
module attributes {stable_mosaic.version = 11 : i64} {
  func.func @dropout_kernel(%arg0: i32, %arg1: memref<1xi32, #tpu.memory_space<smem>>, %arg2: memref<8x128xf32, #tpu.memory_space<vmem>>, %arg3: memref<8x128xf32, #tpu.memory_space<vmem>>) attributes {dimension_semantics = [#tpu.dimension_semantics<parallel>], iteration_bounds = array<i64: 1>, scalar_prefetch = 0 : i64, scratch_operands = 0 : i64, tpu.core_type = #tpu.core_type<tc>, window_params = [{transform_indices = @transform_0, window_bounds = array<i64: 1>}, {transform_indices = @transform_1, window_bounds = array<i64: 8, 128>}, {transform_indices = @transform_2, window_bounds = array<i64: 8, 128>}]} {
    %0 = tpu.iota {dimensions = array<i32: 0>} : vector<8x128xi32>
    %1 = tpu.iota {dimensions = array<i32: 1>} : vector<8x128xi32>
    %c8_i32 = arith.constant 8 : i32
    %2 = arith.muli %arg0, %c8_i32 : i32
    %3 = vector.broadcast %2 : i32 to vector<8x128xi32>
    %4 = arith.addi %3, %0 : vector<8x128xi32>
    %c128_i32 = arith.constant 128 : i32
    %5 = vector.broadcast %c128_i32 : i32 to vector<8x128xi32>
    %6 = arith.muli %4, %5 : vector<8x128xi32>
    %7 = arith.addi %6, %1 : vector<8x128xi32>
    %c0 = arith.constant 0 : index
    %8 = memref.load %arg1[%c0] : memref<1xi32, #tpu.memory_space<smem>>
    %9 = vector.broadcast %8 : i32 to vector<8x128xi32>
    %10 = arith.addi %7, %9 : vector<8x128xi32>
    %c16_i32 = arith.constant 16 : i32
    %11 = vector.broadcast %c16_i32 : i32 to vector<8x128xi32>
    %12 = arith.shrui %10, %11 : vector<8x128xi32>
    %13 = arith.xori %10, %12 : vector<8x128xi32>
    %c-2048144789_i32 = arith.constant -2048144789 : i32
    %14 = vector.broadcast %c-2048144789_i32 : i32 to vector<8x128xi32>
    %15 = arith.muli %13, %14 : vector<8x128xi32>
    %c13_i32 = arith.constant 13 : i32
    %16 = vector.broadcast %c13_i32 : i32 to vector<8x128xi32>
    %17 = arith.shrui %15, %16 : vector<8x128xi32>
    %18 = arith.xori %15, %17 : vector<8x128xi32>
    %c-1028477387_i32 = arith.constant -1028477387 : i32
    %19 = vector.broadcast %c-1028477387_i32 : i32 to vector<8x128xi32>
    %20 = arith.muli %18, %19 : vector<8x128xi32>
    %c16_i32_0 = arith.constant 16 : i32
    %21 = vector.broadcast %c16_i32_0 : i32 to vector<8x128xi32>
    %22 = arith.shrui %20, %21 : vector<8x128xi32>
    %23 = arith.xori %20, %22 : vector<8x128xi32>
    %c-2147483648_i32 = arith.constant -2147483648 : i32
    %24 = vector.broadcast %c-2147483648_i32 : i32 to vector<8x128xi32>
    %25 = arith.cmpi ult, %23, %24 : vector<8x128xi32>
    %26 = arith.extui %25 : vector<8x128xi1> to vector<8x128xi32>
    %27 = arith.sitofp %26 : vector<8x128xi32> to vector<8x128xf32>
    %c0_1 = arith.constant 0 : index
    %c0_2 = arith.constant 0 : index
    %28 = vector.load %arg2[%c0_1, %c0_2] : memref<8x128xf32, #tpu.memory_space<vmem>>, vector<8x128xf32>
    %cst = arith.constant 2.000000e+00 : f32
    %29 = vector.broadcast %cst : f32 to vector<8x128xf32>
    %30 = arith.mulf %27, %29 : vector<8x128xf32>
    %31 = arith.mulf %28, %30 : vector<8x128xf32>
    %c0_3 = arith.constant 0 : index
    %c0_4 = arith.constant 0 : index
    %32 = vector.load %arg3[%c0_3, %c0_4] : memref<8x128xf32, #tpu.memory_space<vmem>>, vector<8x128xf32>
    tpu.vector_store %arg3[%c0_3, %c0_4], %31 {strides = array<i32>} : memref<8x128xf32, #tpu.memory_space<vmem>>, vector<8x128xf32>,
    return
  }
  func.func @transform_0(%arg0: i32) -> i32 {
    %c0_i32 = arith.constant 0 : i32
    %c0_i32_0 = arith.constant 0 : i32
    return %c0_i32 : i32
  }
  func.func @transform_1(%arg0: i32) -> (i32, i32) {
    %c0_i32 = arith.constant 0 : i32
    %c0_i32_0 = arith.constant 0 : i32
    return %arg0, %c0_i32 : i32, i32
  }
  func.func @transform_2(%arg0: i32) -> (i32, i32) {
    %c0_i32 = arith.constant 0 : i32
    %c0_i32_0 = arith.constant 0 : i32
    return %arg0, %c0_i32 : i32, i32
  }
}

</mosaic_0001>

<bundles_post_ra>
// kernel: tpu_custom_call.1
= control target key start
LH: loop header
LB: loop body
LE: loop exit
PB: predicated region body
PF: predicated region fallthrough
CT: control target
= control target key end

     0   :  { %8 = vsyncpa [#allocation4], 0  ;;  %s164_s0 = inlined_call_operand.<no memory space> [shape: s32[1], index: 0, kind: input, shape index: {}]   ;;  %s165_s1 = inlined_call_operand.hbm [shape: f32[8,128], index: 1, kind: input, shape index: {}]   ;;  %s166_s2 = inlined_call_operand.hbm [shape: f32[8,128], index: 2, kind: output, shape index: {}]  }
   0x1   :  { %9 = vsyncpa [#allocation5], 0  ;;  %s119_s9 = smov [#allocation3]   ;;  %s71_s13 = scalar_lea.hbm %s165_s1, 128 }
   0x2   :  { %s18_s10 = sshll.u32 %s119_s9, 4  ;;  %p72_p0 = scmp.ne.s32.totalorder %s165_s1, %s71_s13  ;;  %s19_s10 = int_to_ptr.vmem [resolvable:$true] %s18_s10 }
   0x3   :  { %p75_p1 = scmp.lt.u32.totalorder %s71_s13, %s165_s1 }
   0x5   :  { %p77_p2 = pnand %p75_p1, %p72_p0 }
   0x7   :  { %80 = shalt.err (!%p77_p2)
}
   0x8   :  { %s81_s18 = scalar_lea.vmem %s19_s10, 128  ;;  %p86_p4 = scmp.lt.s32.totalorder %s19_s10, %s19_s10 }
   0x9   :  { %p82_p3 = scmp.ne.s32.totalorder %s19_s10, %s81_s18  ;;  %p87_p5 = scmp.lt.s32.totalorder %s81_s18, %s81_s18 }
   0xb   :  { %p88_p6 = por %p87_p5, %p86_p4 }
   0xd   :  { %p89_p7 = pnand %p88_p6, %p82_p3 }
   0xf   :  { %92 = shalt.err (!%p89_p7)
}
  0x10   :  { %21 = dma.hbm_to_vmem [thread:$0]  %s165_s1, 128, %s19_s10, [#allocation4]  }
  0x11   :  { %115 = dma.done.wait [#allocation4], 128  }
  0x12   :  { %116 = vsyncadd [#allocation4], 4294967168  ;;  %v25_v0 = vlaneseq  ;;  %v35_v4 = vstv %s164_s0  ;;  %v120_v15 = vmov 0.0   ;;  %v48_v17 = vld [vmem:[#allocation3] sm:$0xff]  ;;  %s121_s1 = smov [#allocation6]  }
  0x13   :  { %s58_s23 = sshll.u32 %s121_s1, 4  ;;  %s59_s23 = int_to_ptr.vmem [resolvable:$true] %s58_s23 }
  0x14   :  { %v26_v1 = vshrl.u32 %v25_v0, 7  ;;  %v28_v2 = vand.u32 127, %v25_v0  ;;  %s93_s0 = scalar_lea.vmem %s59_s23, 128  ;;  %p98_p9 = scmp.lt.s32.totalorder %s59_s23, %s59_s23 }
  0x15   :  { %p94_p8 = scmp.ne.s32.totalorder %s59_s23, %s93_s0  ;;  %p99_p10 = scmp.lt.s32.totalorder %s93_s0, %s93_s0 }
  0x16   :  { %v32_v3 = vmul.u32 128, %v26_v1 }
  0x17   :  { %p100_p11 = por %p99_p10, %p98_p9 }
  0x18   :  { %v33_v5 = vadd.s32 %v32_v3, %v28_v2 }
  0x19   :  { %p101_p12 = pnand %p100_p11, %p94_p8 }
  0x1a   :  { %v36_v6 = vadd.s32 %v35_v4, %v33_v5 }
  0x1c   :  { %v37_v7 = vshrl.u32 %v36_v6, 16 }
  0x1e   :  { %v38_v8 = vxor.u32 %v37_v7, %v36_v6 }
  0x20   :  { %v39_v9 = vmul.u32 2246822507, %v38_v8 }
  0x22   :  { %v40_v10 = vshrl.u32 %v39_v9, 13 }
  0x24   :  { %v41_v11 = vxor.u32 %v40_v10, %v39_v9 }
  0x26   :  { %v42_v12 = vmul.u32 3266489909, %v41_v11 }
  0x28   :  { %v43_v13 = vshrl.u32 %v42_v12, 16 }
  0x2a   :  { %v44_v14 = vxor.u32 %v43_v13, %v42_v12 }
  0x2c   :  { %vm45_vm0 = vcmp.lt.u32.totalorder %v44_v14, 2147483648 }
  0x2d   :  { %v67_v16 = vsel %vm45_vm0, 1.0, %v120_v15 }
  0x2e   :  { %v49_v18 = vmul.f32 2.0, %v67_v16 }
  0x30   :  { %v50_v19 = vmul.f32 %v49_v18, %v48_v17 }
  0x32   :  { %51 = vst [vmem:[#allocation6] sm:$0xff] %v50_v19 }
  0x33   :  { %104 = shalt.err (!%p101_p12)
}
  0x34   :  { %s105_s26 = scalar_lea.hbm %s166_s2, 128 }
  0x35   :  { %p106_p13 = scmp.ne.s32.totalorder %s166_s2, %s105_s26  ;;  %p109_p0 = scmp.lt.u32.totalorder %s105_s26, %s166_s2 }
  0x37   :  { %p111_p1 = pnand %p109_p0, %p106_p13 }
  0x39   :  { %114 = shalt.err (!%p111_p1)
}
  0x3a   :  { %61 = dma.vmem_to_hbm [thread:$0]  %s59_s23, 128, %s166_s2, [#allocation5]  }
  0x3b   :  { %117 = dma.done.wait [#allocation5], 128  }
  0x3c   :  { %118 = vsyncadd [#allocation5], 4294967168 }
  0x3d   :  { %65 = vsyncpa [#allocation4], 1 }
  0x3e   :  { %66 = vsyncpa [#allocation5], 1 }

</bundles_post_ra>
